<compile_context>
chip_gen: v7x
topology: tpu7x:2x2x1
jax: 0.10.0
libtpu: 0.0.40
codegen_flags: <defaults>
</compile_context>

<pallas_src>
import functools

import jax
import jax.numpy as jnp
from jax.experimental import pallas as pl
from jax.experimental.pallas import tpu as pltpu


def _round_up(x, m):
    return ((x + m - 1) // m) * m


def _vq_kernel(x_ref, embT_ref, emb_ref, q_ref, cnt_ref, sse_ref, *,
               n_valid, tile_n, needs_mask):
    """One TILE_N-row tile: nearest-code lookup + quantize + partial stats.

    x_ref:    (T, D+1)  input rows augmented with a ones column     (VMEM)
    embT_ref: (D+1, Kp) rows 0..D-1 = -2*e_d, row D = ||e||^2 + pad (resident)
    emb_ref:  (Kp, D+1) f32 codebook + trailing ones column          (resident)
    q_ref:    (T, D+1)  quantized rows (+ ones column)               (VMEM)
    cnt_ref:  (1, 1, Kp)  per-tile one-hot column sums (MXU dot)
    sse_ref:  (1, 1, D+1) per-tile column-wise sum of squared error
    """
    x = x_ref[...]                                   # (T, D+1) native dtype
    T, Dp1 = x.shape
    Kp = embT_ref.shape[1]

    # Distances straight off the MXU: dist = ||e||^2 - 2 x.e (+1e30 on padded
    # codes).  The ||x||^2 row offset does not change the argmin.  No VPU
    # post-processing at all (scale and bias folded into the operands).
    dist = jnp.dot(x, embT_ref[...], preferred_element_type=jnp.float32)  # (T, Kp)

    # argmin with first-index tie-break (matches torch.argmin).  The lane iota
    # is (1, Kp) and broadcast — never materialize a (T, Kp) iota.
    lane_f = jax.lax.broadcasted_iota(jnp.int32, (1, Kp), 1).astype(jnp.float32)
    min_d = jnp.min(dist, axis=1, keepdims=True)                          # (T, 1)
    idx = jnp.min(jnp.where(dist <= min_d, lane_f, float(Kp)),
                  axis=1, keepdims=True)                                  # (T, 1)
    enc = (lane_f == idx).astype(jnp.float32)                             # (T, Kp)
    # TODO(synk): collapse the two cross-lane reductions into one paired
    # value+index lane reduce once jnp.argmin lowers to a single XLU pass.

    # Quantize on the MXU.  emb_ref keeps the f32 codebook (exact code rows)
    # plus a trailing ones column, so diff's last column is exactly 0 for
    # every valid row and the mse denominator stays N*D.
    q = jnp.dot(enc, emb_ref[...], preferred_element_type=jnp.float32)    # (T, D+1)
    # TODO(synk): for D << 128 this store is lane-masked; a lane-dense
    # relayout of q only pays off if the vst slot binds (v5e).
    q_ref[...] = q.astype(q_ref.dtype)

    # Row-validity vector (1, T): masks grid-padding rows and doubles as the
    # "ones" operand that moves both column reductions onto the MXU.
    if needs_mask:
        base = pl.program_id(0) * tile_n
        ids = jax.lax.broadcasted_iota(jnp.int32, (1, T), 1)
        valid = (ids < (n_valid - base)).astype(jnp.float32)              # (1, T)
    else:
        valid = jnp.ones((1, T), jnp.float32)

    diff = q - x.astype(jnp.float32)                                      # (T, D+1)
    sq = diff * diff
    cnt_ref[...] = jnp.dot(valid, enc,
                           preferred_element_type=jnp.float32).reshape(1, 1, Kp)
    sse_ref[...] = jnp.dot(valid, sq,
                           preferred_element_type=jnp.float32).reshape(1, 1, Dp1)


def vector_quantizer_ema_forward(x_nchw, embedding, commitment_cost=0.25,
                                 tile_n=1024,
                                 vmem_limit_bytes=48 * 1024 * 1024):
    """Forward pass matching VectorQuantizerEMA.forward.

    x_nchw:    (B, C, H, W) with C == embedding_dim
    embedding: (K, D) codebook
    returns:   (quantized_nchw, loss_scalar, perplexity_scalar)
    """
    B, C, H, W = x_nchw.shape
    D = C
    K = embedding.shape[0]
    N = B * H * W
    Dp1 = D + 1

    # NCHW -> NHWC -> (N, D).  Keep bf16 activations bf16 (native MXU operands
    # for the distance matmul); anything else runs as f32.
    x_nhwc = jnp.transpose(x_nchw, (0, 2, 3, 1))
    flat = x_nhwc.reshape(N, D)
    if flat.dtype != jnp.float32 and flat.dtype != jnp.bfloat16:
        flat = flat.astype(jnp.float32)
    in_dtype = flat.dtype
    mxu_dtype = in_dtype          # bf16 distance operands iff activations bf16

    # Pad the codebook to a lane-dense multiple of 128 codes; build the fused
    # distance operand ([-2*e ; ||e||^2 + pad_bias]) and the fused quantize
    # operand ([e , 1]) once in the wrapper (never per grid step).
    Kp = _round_up(K, 128)
    emb_f32 = embedding.astype(jnp.float32)
    emb_p = jnp.zeros((Kp, D), jnp.float32).at[:K, :].set(emb_f32)
    pad_bias = jnp.where(jnp.arange(Kp) >= K, 1e30, 0.0).astype(jnp.float32)
    e2 = jnp.sum(emb_p * emb_p, axis=1)                                   # ||e||^2
    embT_aug = jnp.concatenate([-2.0 * emb_p.T, (e2 + pad_bias)[None, :]],
                               axis=0).astype(mxu_dtype)                  # (D+1, Kp)
    ones_col = jnp.where(jnp.arange(Kp) < K, 1.0, 0.0).astype(jnp.float32)
    emb_aug = jnp.concatenate([emb_p, ones_col[:, None]], axis=1)         # (Kp, D+1) f32

    # Ones-augmented inputs in the activation dtype.
    flat_aug = jnp.concatenate([flat, jnp.ones((N, 1), in_dtype)], axis=1)

    # Row tiling: cap at ceil(N/2) so >= 2 grid tiles exist (v7x 2-TC sharding),
    # round to a sublane multiple, pad N up to a whole number of tiles.
    max_tile = max(8, _round_up(pl.cdiv(N, 2), 8))
    tile_n = max(8, min(_round_up(int(tile_n), 8), max_tile))
    n_pad = _round_up(N, tile_n)
    num_tiles = n_pad // tile_n
    needs_mask = n_pad != N
    if needs_mask:
        flat_in = jnp.zeros((n_pad, Dp1), in_dtype).at[:N, :].set(flat_aug)
    else:
        flat_in = flat_aug

    kernel = functools.partial(_vq_kernel, n_valid=N, tile_n=tile_n,
                               needs_mask=needs_mask)

    # TODO(synk): the three resident operands could be single-buffered via
    # pipeline_mode=pl.Buffered(1); skipped here (few-KB saving only).
    q_pad, counts, sse = pl.pallas_call(
        kernel,
        grid=(num_tiles,),
        out_shape=(
            jax.ShapeDtypeStruct((n_pad, Dp1), in_dtype),
            jax.ShapeDtypeStruct((num_tiles, 1, Kp), jnp.float32),
            jax.ShapeDtypeStruct((num_tiles, 1, Dp1), jnp.float32),
        ),
        in_specs=[
            pl.BlockSpec((tile_n, Dp1), lambda i: (i, 0)),
            pl.BlockSpec((Dp1, Kp), lambda i: (0, 0)),     # resident dist operand
            pl.BlockSpec((Kp, Dp1), lambda i: (0, 0)),     # resident codebook
        ],
        out_specs=(
            pl.BlockSpec((tile_n, Dp1), lambda i: (i, 0)),
            pl.BlockSpec((1, 1, Kp), lambda i: (i, 0, 0)),
            pl.BlockSpec((1, 1, Dp1), lambda i: (i, 0, 0)),
        ),
        compiler_params=pltpu.CompilerParams(
            dimension_semantics=("parallel",),
            vmem_limit_bytes=vmem_limit_bytes,
        ),
    )(flat_in, embT_aug, emb_aug)

    # Tiny cross-tile reductions in plain JAX (keeps the grid axis parallel).
    total_sse = jnp.sum(sse)          # ones-column diffs are exactly 0
    mse = total_sse / (N * D)
    # Forward values of q_latent_loss and e_latent_loss are identical; the
    # detach() only matters for gradients.
    # TODO(synk): gradients (straight-through estimator / detach) need a
    # custom_vjp; this kernel is forward-value only.
    loss = (1.0 + commitment_cost) * mse
    code_counts = jnp.sum(counts.reshape(num_tiles, Kp), axis=0)[:K]
    avg_probs = code_counts / N
    perplexity = jnp.exp(-jnp.sum(avg_probs * jnp.log(avg_probs + 1e-10)))

    q_nhwc = q_pad[:N, :D].reshape(B, H, W, D)
    q_nchw = jnp.transpose(q_nhwc, (0, 3, 1, 2))                  # NHWC->NCHW
    return q_nchw, loss, perplexity


def _reference_forward(x_nchw, embedding, commitment_cost=0.25):
    """Pure-JAX reference mirroring the PyTorch forward (correctness check)."""
    B, C, H, W = x_nchw.shape
    inputs = jnp.transpose(x_nchw, (0, 2, 3, 1)).astype(jnp.float32)
    flat = inputs.reshape(-1, C)
    dist = (jnp.sum(flat ** 2, axis=1, keepdims=True)
            + jnp.sum(embedding ** 2, axis=1)
            - 2.0 * flat @ embedding.T)
    idx = jnp.argmin(dist, axis=1)
    enc = jax.nn.one_hot(idx, embedding.shape[0], dtype=jnp.float32)
    q = (enc @ embedding).reshape(inputs.shape)
    mse = jnp.mean((q - inputs) ** 2)
    loss = (1.0 + commitment_cost) * mse
    avg_probs = jnp.mean(enc, axis=0)
    perp = jnp.exp(-jnp.sum(avg_probs * jnp.log(avg_probs + 1e-10)))
    return jnp.transpose(q, (0, 3, 1, 2)), loss, perp


if __name__ == "__main__":
    # Module hyperparameters (small, deterministic, in-script)
    n_embeddings = 64
    embedding_dim = 4            # == channel dim C of the NCHW input
    commitment_cost = 0.25
    B, H, W = 2, 16, 16

    key = jax.random.PRNGKey(0)
    k_emb, k_idx, k_noise = jax.random.split(key, 3)

    # nn.Embedding weight initialized uniform(-1/K, 1/K), exactly like __init__
    embedding = jax.random.uniform(
        k_emb, (n_embeddings, embedding_dim),
        minval=-1.0 / n_embeddings, maxval=1.0 / n_embeddings,
        dtype=jnp.float32)

    # Example input: codebook entries + a small perturbation (VQ-VAE-like
    # activations; keeps nearest-code decisions far from fp round-off so the
    # argmin is unambiguous for the cross-implementation check).
    seed_idx = jax.random.randint(k_idx, (B * H * W,), 0, n_embeddings)
    noise = 2e-4 * jax.random.normal(
        k_noise, (B * H * W, embedding_dim), dtype=jnp.float32)
    flat_x = embedding[seed_idx] + noise
    x = jnp.transpose(flat_x.reshape(B, H, W, embedding_dim), (0, 3, 1, 2))

    q, loss, perp = vector_quantizer_ema_forward(x, embedding, commitment_cost)
    jax.block_until_ready((q, loss, perp))

    # Correctness check against the pure-JAX reference
    q_ref, loss_ref, perp_ref = _reference_forward(x, embedding, commitment_cost)
    assert q.shape == x.shape
    assert jnp.allclose(q, q_ref, atol=1e-5, rtol=1e-5)
    assert jnp.allclose(loss, loss_ref, atol=1e-6, rtol=1e-4)
    assert jnp.allclose(perp, perp_ref, atol=1e-3, rtol=1e-4)

    print("KERNEL_OK")
</pallas_src>

<mosaic_0001>
module attributes {stable_mosaic.version = 11 : i64} {
  func.func @_vq_kernel(%arg0: i32, %arg1: memref<256x5xf32, #tpu.memory_space<vmem>>, %arg2: memref<5x128xf32, #tpu.memory_space<vmem>>, %arg3: memref<128x5xf32, #tpu.memory_space<vmem>>, %arg4: memref<256x5xf32, #tpu.memory_space<vmem>>, %arg5: memref<1x1x128xf32, #tpu.memory_space<vmem>>, %arg6: memref<1x1x5xf32, #tpu.memory_space<vmem>>) attributes {dimension_semantics = [#tpu.dimension_semantics<parallel>], iteration_bounds = array<i64: 2>, scalar_prefetch = 0 : i64, scratch_operands = 0 : i64, tpu.core_type = #tpu.core_type<tc>, window_params = [{transform_indices = @transform_0, window_bounds = array<i64: 256, 5>}, {pipeline_mode = #tpu.pipeline_mode<synchronous>, transform_indices = @transform_1, window_bounds = array<i64: 5, 128>}, {pipeline_mode = #tpu.pipeline_mode<synchronous>, transform_indices = @transform_2, window_bounds = array<i64: 128, 5>}, {transform_indices = @transform_3, window_bounds = array<i64: 256, 5>}, {transform_indices = @transform_4, window_bounds = array<i64: 1, 1, 128>}, {transform_indices = @transform_5, window_bounds = array<i64: 1, 1, 5>}]} {
    %c0 = arith.constant 0 : index
    %c0_0 = arith.constant 0 : index
    %0 = vector.load %arg1[%c0, %c0_0] : memref<256x5xf32, #tpu.memory_space<vmem>>, vector<256x5xf32>
    %c0_1 = arith.constant 0 : index
    %c0_2 = arith.constant 0 : index
    %1 = vector.load %arg2[%c0_1, %c0_2] : memref<5x128xf32, #tpu.memory_space<vmem>>, vector<5x128xf32>
    %cst = arith.constant dense<0.000000e+00> : vector<256x128xf32>
    %2 = tpu.matmul %0, %1, %cst {dimension_numbers = #tpu.dot_dimension_numbers<[1], [0], [0], [1], [0, 0, 1, 1], [], []>} : vector<256x5xf32>, vector<5x128xf32>, vector<256x128xf32> -> vector<256x128xf32>
    %3 = tpu.iota {dimensions = array<i32: 1>} : vector<1x128xi32>
    %4 = arith.sitofp %3 : vector<1x128xi32> to vector<1x128xf32>
    %cst_3 = arith.constant dense<0x7F800000> : vector<256xf32>
    %5 = vector.multi_reduction <minimumf>, %2, %cst_3 [1] : vector<256x128xf32> to vector<256xf32>
    %6 = vector.shape_cast %5 : vector<256xf32> to vector<256x1xf32>
    %7 = vector.broadcast %6 : vector<256x1xf32> to vector<256x128xf32>
    %8 = arith.cmpf ole, %2, %7 : vector<256x128xf32>
    %cst_4 = arith.constant 1.280000e+02 : f32
    %9 = vector.shape_cast %4 : vector<1x128xf32> to vector<1x128xf32>
    %10 = vector.broadcast %9 : vector<1x128xf32> to vector<256x128xf32>
    %11 = vector.broadcast %cst_4 : f32 to vector<256x128xf32>
    %12 = arith.select %8, %10, %11 : vector<256x128xi1>, vector<256x128xf32>
    %cst_5 = arith.constant dense<0x7F800000> : vector<256xf32>
    %13 = vector.multi_reduction <minimumf>, %12, %cst_5 [1] : vector<256x128xf32> to vector<256xf32>
    %14 = vector.shape_cast %13 : vector<256xf32> to vector<256x1xf32>
    %15 = vector.broadcast %4 : vector<1x128xf32> to vector<256x128xf32>
    %16 = vector.broadcast %14 : vector<256x1xf32> to vector<256x128xf32>
    %17 = arith.cmpf oeq, %15, %16 : vector<256x128xf32>
    %18 = arith.extui %17 : vector<256x128xi1> to vector<256x128xi32>
    %19 = arith.sitofp %18 : vector<256x128xi32> to vector<256x128xf32>
    %c0_6 = arith.constant 0 : index
    %c0_7 = arith.constant 0 : index
    %20 = vector.load %arg3[%c0_6, %c0_7] : memref<128x5xf32, #tpu.memory_space<vmem>>, vector<128x5xf32>
    %cst_8 = arith.constant dense<0.000000e+00> : vector<256x5xf32>
    %21 = tpu.matmul %19, %20, %cst_8 {dimension_numbers = #tpu.dot_dimension_numbers<[1], [0], [0], [1], [0, 0, 1, 1], [], []>} : vector<256x128xf32>, vector<128x5xf32>, vector<256x5xf32> -> vector<256x5xf32>
    %c0_9 = arith.constant 0 : index
    %c0_10 = arith.constant 0 : index
    %22 = vector.load %arg4[%c0_9, %c0_10] : memref<256x5xf32, #tpu.memory_space<vmem>>, vector<256x5xf32>
    tpu.vector_store %arg4[%c0_9, %c0_10], %21 {strides = array<i32>} : memref<256x5xf32, #tpu.memory_space<vmem>>, vector<256x5xf32>,
    %cst_11 = arith.constant 1.000000e+00 : f32
    %23 = vector.broadcast %cst_11 : f32 to vector<1x256xf32>
    %24 = arith.subf %21, %0 : vector<256x5xf32>
    %25 = arith.mulf %24, %24 : vector<256x5xf32>
    %cst_12 = arith.constant dense<0.000000e+00> : vector<1x128xf32>
    %26 = tpu.matmul %23, %19, %cst_12 {dimension_numbers = #tpu.dot_dimension_numbers<[1], [0], [0], [1], [0, 0, 1, 1], [], []>} : vector<1x256xf32>, vector<256x128xf32>, vector<1x128xf32> -> vector<1x128xf32>
    %27 = vector.shape_cast %26 : vector<1x128xf32> to vector<1x1x128xf32>
    %c0_13 = arith.constant 0 : index
    %c0_14 = arith.constant 0 : index
    %c0_15 = arith.constant 0 : index
    %28 = vector.load %arg5[%c0_13, %c0_14, %c0_15] : memref<1x1x128xf32, #tpu.memory_space<vmem>>, vector<1x1x128xf32>
    tpu.vector_store %arg5[%c0_13, %c0_14, %c0_15], %27 {strides = array<i32>} : memref<1x1x128xf32, #tpu.memory_space<vmem>>, vector<1x1x128xf32>,
    %cst_16 = arith.constant dense<0.000000e+00> : vector<1x5xf32>
    %29 = tpu.matmul %23, %25, %cst_16 {dimension_numbers = #tpu.dot_dimension_numbers<[1], [0], [0], [1], [0, 0, 1, 1], [], []>} : vector<1x256xf32>, vector<256x5xf32>, vector<1x5xf32> -> vector<1x5xf32>
    %30 = vector.shape_cast %29 : vector<1x5xf32> to vector<1x1x5xf32>
    %c0_17 = arith.constant 0 : index
    %c0_18 = arith.constant 0 : index
    %c0_19 = arith.constant 0 : index
    %31 = vector.load %arg6[%c0_17, %c0_18, %c0_19] : memref<1x1x5xf32, #tpu.memory_space<vmem>>, vector<1x1x5xf32>
    tpu.vector_store %arg6[%c0_17, %c0_18, %c0_19], %30 {strides = array<i32>} : memref<1x1x5xf32, #tpu.memory_space<vmem>>, vector<1x1x5xf32>,
    return
  }
  func.func @transform_0(%arg0: i32) -> (i32, i32) {
    %c0_i32 = arith.constant 0 : i32
    %c0_i32_0 = arith.constant 0 : i32
    return %arg0, %c0_i32 : i32, i32
  }
  func.func @transform_1(%arg0: i32) -> (i32, i32) {
    %c0_i32 = arith.constant 0 : i32
    %c0_i32_0 = arith.constant 0 : i32
    %c0_i32_1 = arith.constant 0 : i32
    return %c0_i32, %c0_i32_0 : i32, i32
  }
  func.func @transform_2(%arg0: i32) -> (i32, i32) {
    %c0_i32 = arith.constant 0 : i32
    %c0_i32_0 = arith.constant 0 : i32
    %c0_i32_1 = arith.constant 0 : i32
    return %c0_i32, %c0_i32_0 : i32, i32
  }
  func.func @transform_3(%arg0: i32) -> (i32, i32) {
    %c0_i32 = arith.constant 0 : i32
    %c0_i32_0 = arith.constant 0 : i32
    return %arg0, %c0_i32 : i32, i32
  }
  func.func @transform_4(%arg0: i32) -> (i32, i32, i32) {
    %c0_i32 = arith.constant 0 : i32
    %c0_i32_0 = arith.constant 0 : i32
    %c0_i32_1 = arith.constant 0 : i32
    return %arg0, %c0_i32, %c0_i32_0 : i32, i32, i32
  }
  func.func @transform_5(%arg0: i32) -> (i32, i32, i32) {
    %c0_i32 = arith.constant 0 : i32
    %c0_i32_0 = arith.constant 0 : i32
    %c0_i32_1 = arith.constant 0 : i32
    return %arg0, %c0_i32, %c0_i32_0 : i32, i32, i32
  }
}

</mosaic_0001>

<bundles_post_ra>
// kernel: tpu_custom_call.1
= control target key start
LH: loop header
LB: loop body
LE: loop exit
PB: predicated region body
PF: predicated region fallthrough
CT: control target
= control target key end

     0   :  { %11 = vsyncpa [#allocation3], 0  ;;  %s3111_s0 = inlined_call_operand.vmem [shape: f32[512,5], index: 0, kind: input, shape index: {}]   ;;  %s3112_s1 = inlined_call_operand.vmem [shape: f32[5,128], index: 1, kind: input, shape index: {}]   ;;  %s3113_s2 = inlined_call_operand.vmem [shape: f32[128,5], index: 2, kind: input, shape index: {}]   ;;  %s3114_s3 = inlined_call_operand.vmem [shape: f32[512,5], index: 3, kind: output, shape index: {0}]   ;;  %s3115_s4 = inlined_call_operand.hbm [shape: f32[2,1,128], index: 4, kind: output, shape index: {1}]   ;;  %s3116_s5 = inlined_call_operand.hbm [shape: f32[2,1,5], index: 5, kind: output, shape index: {2}]  }
   0x1   :  { %13 = vsyncpa [#allocation3 + $0x1], 0 }
   0x2   :  { %14 = vsyncpa [#allocation5], 0 }
   0x3   :  { %16 = vsyncpa [#allocation5 + $0x1], 0  ;;  %s2221_s18 = smov 0   ;;  %s2223_s19 = smov 0  }
   0x4   :  { %s2225_s20 = smov 0   ;;  %s2227_s21 = smov 0  }
   0x5 LB: > { %s2242_s22 = sadd.s32 4294967295, %s2185_s21   ;;  %s1524_s23 = sadd.s32 4294967294, %s2185_s21   ;;  %s2185_s21 = sphi %s2227_s21, %s3195_s21   ;;  %s2181_s20 = sphi %s2225_s20, %s3194_s20   ;;  %s2177_s19 = sphi %s2223_s19, %s3193_s19   ;;  %s2173_s18 = sphi %s2221_s18, %s3192_s18  }
   0x6   : > { %s2246_s24 = sadd.s32 1, %s2185_s21   ;;  %s123_s25 = sadd.s32 1, %s2181_s20 }
   0x7   : > { %s120_s26 = ssub.s32 %s2185_s21, %s2246_s24  ;;  %p133_p0 = scmp.ne.s32.totalorder %s2181_s20, %s2177_s19 }
   0x8   : > { %p121_p1 = scmp.eq.s32.totalorder %s120_s26, 0  ;;  %p134_p2 = scmp.eq.s32.totalorder %s2242_s22, 1 }
   0x9   : > { %p139_p3 = scmp.ne.s32.totalorder %s2177_s19, %s2173_s18  ;;  %p140_p4 = scmp.eq.s32.totalorder %s1524_s23, 1 }
   0xa   : > { %s2257_s27 = scalar_select %p121_p1, %s2181_s20, %s123_s25  }
   0xb   : > { %p2259_p5 = por %p134_p2, %p133_p0  ;;  %p2263_p6 = por %p140_p4, %p139_p3 }
   0xc   : > { %p1527_p7 = scmp.ge.s32.totalorder %s2185_s21, 1  ;;  %p199_p8 = scmp.lt.s32.totalorder %s2185_s21, 3 }
   0xe   : > { %p200_p9 = pnand %p1527_p7, %p199_p8 }
  0x10   : > { %203 = sbr.rel (%p200_p9) target bundleno = 1047 (0x417), region = 32 }
  0x17   : > { %v279_v0 = vld [vmem:[%s3112_s1] sm:$0x1f]  ;;  %vm377_vm0 = vcmask 1044480   ;;  %s1528_s7 = sshll.u32 %s2242_s22, 5  ;;  %vm3126_vm1 = vcmask 39936   ;;  %s2189_s14 = smov [#allocation2]  }
  0x18   : > { %1816 = vmatprep.subr.msk.mxu0 %vm377_vm0, %v279_v0  ;;  %p236_p10 = scmp.lt.s32.totalorder %s1528_s7, 63  ;;  %s2095_s15 = sshll.u32 %s2189_s14, 4  ;;  %s2096_s15 = int_to_ptr.vmem [resolvable:$false] %s2095_s15 }
  0x19   : > { %1817 = vmatpush3.msk.msra.mxu0 %vm377_vm0, %v279_v0  ;;  %s2097_s16 = scalar_lea.vmem %s2096_s15, 32 }
  0x1a   : > { %s3197_s7 = smov (!%p236_p10, %s1528_s7), 63 }
  0x1b   : > { %s1529_s8 = sshll.u32 %s3197_s7, 3  ;;  %s3033_s7 = sand.u32 1, %s2177_s19  }
  0x1c   : > { %s2281_s11 = scalar_lea.vmem %s3111_s0, %s1529_s8  ;;  %s2861_s26 = scalar_lea.vmem %s3114_s3, %s1529_s8 }
  0x1d   : > { %v2284_v1 = vld [vmem:[%s2281_s11] sm:$0xff]  ;;  %v2287_v2 = vld [vmem:[%s2281_s11 + $0x8] sm:$0xff]  ;;  %v2290_v3 = vld [vmem:[%s2281_s11 + $0x10] sm:$0xff]  ;;  %s1661_s8 = sshll.u32 %s2242_s22, 4  ;;  %s1383_s12 = scalar_lea.sflag [#allocation3], %s3033_s7 }
  0x1e   : > { %1818 = vmatprep.mubr.msk.f32.mxu0 %vm3126_vm1, %v2284_v1  ;;  %v2299_v4 = vld [vmem:[%s2281_s11 + $0x18] sm:$0xff]  ;;  %v2302_v5 = vld [vmem:[%s2281_s11 + $0x20] sm:$0xff]  ;;  %v2309_v6 = vld [vmem:[%s2281_s11 + $0x28] sm:$0xff]  ;;  %s3042_s9 = scalar_lea.hbm %s3115_s4, %s1661_s8 }
  0x1f   : > { %1819 = vmatmul.mubr.msk.f32.vlgmr.msra.gmra.mrb[0].mxu0 %vm3126_vm1, %v2287_v2  ;;  %v2312_v7 = vld [vmem:[%s2281_s11 + $0x30] sm:$0xff]  ;;  %v2319_v8 = vld [vmem:[%s2281_s11 + $0x38] sm:$0xff]  ;;  %v2322_v9 = vld [vmem:[%s2281_s11 + $0x40] sm:$0xff] }
  0x20   : > { %1821 = vmatprep.mubr.msk.f32.mxu0 %vm3126_vm1, %v2290_v3  ;;  %v2329_v10 = vld [vmem:[%s2281_s11 + $0x48] sm:$0xff]  ;;  %v2332_v11 = vld [vmem:[%s2281_s11 + $0x50] sm:$0xff]  ;;  %v2339_v12 = vld [vmem:[%s2281_s11 + $0x58] sm:$0xff] }
  0x21   : > { %v2342_v13 = vld [vmem:[%s2281_s11 + $0x60] sm:$0xff]  ;;  %v2349_v14 = vld [vmem:[%s2281_s11 + $0x68] sm:$0xff]  ;;  %v2352_v15 = vld [vmem:[%s2281_s11 + $0x70] sm:$0xff] }
  0x22   : > { %v2359_v16 = vld [vmem:[%s2281_s11 + $0x78] sm:$0xff]  ;;  %v2362_v17 = vld [vmem:[%s2281_s11 + $0x80] sm:$0xff]  ;;  %v2369_v18 = vld [vmem:[%s2281_s11 + $0x88] sm:$0xff] }
  0x23   : > { %1822 = vmatmul.mubr.msk.f32.gmra.mrb[2].mxu0 %vm3126_vm1, %v2299_v4  ;;  %v2372_v19 = vld [vmem:[%s2281_s11 + $0x90] sm:$0xff]  ;;  %v2379_v20 = vld [vmem:[%s2281_s11 + $0x98] sm:$0xff]  ;;  %v2382_v21 = vld [vmem:[%s2281_s11 + $0xa0] sm:$0xff] }
  0x24   : > { %1824 = vmatprep.mubr.msk.f32.mxu0 %vm3126_vm1, %v2302_v5  ;;  %3136 = vst [vmem:[#allocation8_spill] sm:$0xff] %v2382_v21  ;;  %v2389_v22 = vld [vmem:[%s2281_s11 + $0xa8] sm:$0xff]  ;;  %v2392_v23 = vld [vmem:[%s2281_s11 + $0xb0] sm:$0xff]  ;;  %v2399_v24 = vld [vmem:[%s2281_s11 + $0xb8] sm:$0xff] }
  0x25   : > { %3137 = vst [vmem:[#allocation9_spill] sm:$0xff] %v2389_v22  ;;  %3138 = vst [vmem:[#allocation10_spill] sm:$0xff] %v2392_v23  ;;  %v2402_v25 = vld [vmem:[%s2281_s11 + $0xc0] sm:$0xff]  ;;  %v2409_v26 = vld [vmem:[%s2281_s11 + $0xc8] sm:$0xff] }
  0x26   : > { %3139 = vst [vmem:[#allocation11_spill] sm:$0xff] %v2399_v24  ;;  %3140 = vst [vmem:[#allocation12_spill] sm:$0xff] %v2402_v25  ;;  %v2412_v27 = vld [vmem:[%s2281_s11 + $0xd0] sm:$0xff]  ;;  %v2419_v28 = vld [vmem:[%s2281_s11 + $0xd8] sm:$0xff] }
  0x27   : > { %1825 = vmatmul.mubr.msk.f32.gmra.mrb[4].mxu0 %vm3126_vm1, %v2309_v6  ;;  %3141 = vst [vmem:[#allocation13_spill] sm:$0xff] %v2409_v26  ;;  %3142 = vst [vmem:[#allocation14_spill] sm:$0xff] %v2412_v27  ;;  %v275_v29 = vld [vmem:[%s2281_s11 + $0xe0] sm:$0xff]  ;;  %v2426_v30 = vld [vmem:[%s2281_s11 + $0xe8] sm:$0xff] }
  0x28   : > { %1827 = vmatprep.mubr.msk.f32.mxu0 %vm3126_vm1, %v2312_v7  ;;  %3143 = vst [vmem:[#allocation15_spill] sm:$0xff] %v2419_v28  ;;  %3144 = vst [vmem:[#allocation16_spill] sm:$0xff] %v2426_v30  ;;  %v277_v31 = vld [vmem:[%s2281_s11 + $0xf0] sm:$0xff]  ;;  %v278_v32 = vld [vmem:[%s2281_s11 + $0xf8] sm:$0xff] }
  0x2b   : > { %1828 = vmatmul.mubr.msk.f32.gmra.mrb[6].mxu0 %vm3126_vm1, %v2319_v8 }
  0x2c   : > { %1830 = vmatprep.mubr.msk.f32.mxu0 %vm3126_vm1, %v2322_v9 }
  0x2f   : > { %1831 = vmatmul.mubr.msk.f32.gmra.mrb[8].mxu0 %vm3126_vm1, %v2329_v10 }
  0x30   : > { %1833 = vmatprep.mubr.msk.f32.mxu0 %vm3126_vm1, %v2332_v11 }
  0x33   : > { %1834 = vmatmul.mubr.msk.f32.gmra.mrb[10].mxu0 %vm3126_vm1, %v2339_v12 }
  0x34   : > { %1836 = vmatprep.mubr.msk.f32.mxu0 %vm3126_vm1, %v2342_v13 }
  0x37   : > { %1837 = vmatmul.mubr.msk.f32.gmra.mrb[12].mxu0 %vm3126_vm1, %v2349_v14 }
  0x38   : > { %1839 = vmatprep.mubr.msk.f32.mxu0 %vm3126_vm1, %v2352_v15 }
  0x3b   : > { %1840 = vmatmul.mubr.msk.f32.gmra.mrb[14].mxu0 %vm3126_vm1, %v2359_v16 }
  0x3c   : > { %1842 = vmatprep.mubr.msk.f32.mxu0 %vm3126_vm1, %v2362_v17 }
  0x3f   : > { %1843 = vmatmul.mubr.msk.f32.gmra.mrb[16].mxu0 %vm3126_vm1, %v2369_v18 }
  0x40   : > { %1845 = vmatprep.mubr.msk.f32.mxu0 %vm3126_vm1, %v2372_v19 }
  0x43   : > { %1846 = vmatmul.mubr.msk.f32.gmra.mrb[18].mxu0 %vm3126_vm1, %v2379_v20 }
  0x44   : > { %1848 = vmatprep.mubr.msk.f32.mxu0 %vm3126_vm1, %v2382_v21 }
  0x47   : > { %1849 = vmatmul.mubr.msk.f32.gmra.mrb[20].mxu0 %vm3126_vm1, %v2389_v22 }
  0x48   : > { %1851 = vmatprep.mubr.msk.f32.mxu0 %vm3126_vm1, %v2392_v23 }
  0x4b   : > { %1852 = vmatmul.mubr.msk.f32.gmra.mrb[22].mxu0 %vm3126_vm1, %v2399_v24 }
  0x4c   : > { %1854 = vmatprep.mubr.msk.f32.mxu0 %vm3126_vm1, %v2402_v25  ;;  %v901_v25 = vld [vmem:[%s3113_s2 + $0x20] sm:$0xff] }
  0x4f   : > { %1855 = vmatmul.mubr.msk.f32.gmra.mrb[24].mxu0 %vm3126_vm1, %v2409_v26  ;;  %v902_v26 = vld [vmem:[%s3113_s2 + $0x28] sm:$0xff] }
  0x50   : > { %1857 = vmatprep.mubr.msk.f32.mxu0 %vm3126_vm1, %v2412_v27  ;;  %v900_v27 = vld [vmem:[%s3113_s2 + $0x18] sm:$0xff]  ;;  %v1954_v23 = vpack.c.bf16 %v902_v26, %v901_v25  ;;  %v907_v26 = vld [vmem:[%s3113_s2 + $0x50] sm:$0xff] }
  0x53   : > { %1858 = vmatmul.mubr.msk.f32.gmra.mrb[26].mxu0 %vm3126_vm1, %v2419_v28 }
  0x54   : > { %1860 = vmatprep.mubr.msk.f32.mxu0 %vm3126_vm1, %v275_v29  ;;  %v897_v29 = vld [vmem:[%s3113_s2] sm:$0xff] }
  0x57   : > { %1861 = vmatmul.mubr.msk.f32.gmra.mrb[28].mxu0 %vm3126_vm1, %v2426_v30 }
  0x58   : > { %1863 = vmatprep.mubr.msk.f32.mxu0 %vm3126_vm1, %v277_v31  ;;  %v898_v31 = vld [vmem:[%s3113_s2 + $0x8] sm:$0xff] }
  0x59   : > { %v1946_v30 = vpack.c.bf16 %v898_v31, %v897_v29  ;;  %v903_v29 = vld [vmem:[%s3113_s2 + $0x30] sm:$0xff] }
  0x5b   : > { %1864 = vmatmul.mubr.msk.f32.gmra.mrb[30].mxu0 %vm3126_vm1, %v278_v32  ;;  %v899_v32 = vld [vmem:[%s3113_s2 + $0x10] sm:$0xff]  ;;  %1947 = vmatprep.subr.bf16.mxu1 %v1946_v30 }
  0x5c   : > { %v1950_v28 = vpack.c.bf16 %v900_v27, %v899_v32  ;;  %1949 = vmatpush3.bf16.msra.mxu1 %v1946_v30  ;;  %v904_v27 = vld [vmem:[%s3113_s2 + $0x38] sm:$0xff]  ;;  %v905_v32 = vld [vmem:[%s3113_s2 + $0x40] sm:$0xff]  ;;  %v906_v30 = vld [vmem:[%s3113_s2 + $0x48] sm:$0xff] }
  0x5d   : > { %v1958_v31 = vpack.c.bf16 %v904_v27, %v903_v29  ;;  %v1962_v25 = vpack.c.bf16 %v906_v30, %v905_v32  ;;  %v909_v27 = vld [vmem:[%s3113_s2 + $0x60] sm:$0xff]  ;;  %v606_v30 = vlaneseq }
  0x5e   : > { %1951 = vmatprep.subr.bf16.mxu1 %v1950_v28 }
  0x5f   : > { %v607_v24 = vand.u32 127, %v606_v30 }
  0x60   : > { %1953 = vmatpush3.bf16.msra.mxu1 %v1950_v28  ;;  %v908_v28 = vld [vmem:[%s3113_s2 + $0x58] sm:$0xff] }
  0x61   : > { %1955 = vmatprep.subr.bf16.mxu1 %v1954_v23  ;;  %v1966_v29 = vpack.c.bf16 %v908_v28, %v907_v26  ;;  %v2572_v21 = vcvt.s32.f32 %v607_v24 }
  0x64   : > { %1957 = vmatpush3.bf16.msra.mxu1 %v1954_v23  ;;  %v910_v23 = vld [vmem:[%s3113_s2 + $0x68] sm:$0xff] }
  0x65   : > { %1959 = vmatprep.subr.bf16.mxu1 %v1958_v31  ;;  %v1970_v32 = vpack.c.bf16 %v910_v23, %v909_v27 }
  0x68   : > { %1961 = vmatpush3.bf16.msra.mxu1 %v1958_v31 }
  0x69   : > { %1963 = vmatprep.subr.bf16.mxu1 %v1962_v25 }
  0x6c   : > { %1965 = vmatpush3.bf16.msra.mxu1 %v1962_v25 }
  0x6d   : > { %1967 = vmatprep.subr.bf16.mxu1 %v1966_v29 }
  0x70   : > { %1969 = vmatpush3.bf16.msra.mxu1 %v1966_v29 }
  0x71   : > { %1971 = vmatprep.subr.bf16.mxu1 %v1970_v32 }
  0x74   : > { %1973 = vmatpush3.bf16.msra.mxu1 %v1970_v32 }
  0xf2   : > { %v2434_v33 = vpop.f32.mrb[0].mxu0 }
  0xf3   : > { %v2436_v34 = vpop.f32.mrb[1].mxu0 }
  0xf4   : > { %609 = vmin.xlane.f32.xlu0 %v2436_v34 }
  0xf6   : > { %v2439_v35 = vpop.f32.mrb[2].mxu0 }
  0xf7   : > { %v2441_v36 = vpop.f32.mrb[3].mxu0 }
  0xf8   : > { %611 = vmin.xlane.f32.xlu0 %v2434_v33  ;;  %613 = vmin.xlane.f32.xlu1 %v2441_v36 }
  0xfa   : > { %v2445_v37 = vpop.f32.mrb[4].mxu0 }
  0xfb   : > { %v2447_v38 = vpop.f32.mrb[5].mxu0 }
  0xfc   : > { %615 = vmin.xlane.f32.xlu1 %v2439_v35  ;;  %617 = vmin.xlane.f32.xlu0 %v2447_v38 }
  0xfe   : > { %v2451_v39 = vpop.f32.mrb[6].mxu0 }
  0xff   : > { %v2453_v40 = vpop.f32.mrb[7].mxu0 }
 0x100   : > { %619 = vmin.xlane.f32.xlu1 %v2445_v37  ;;  %621 = vmin.xlane.f32.xlu0 %v2453_v40 }
 0x102   : > { %v2457_v41 = vpop.f32.mrb[8].mxu0 }
 0x103   : > { %v2459_v42 = vpop.f32.mrb[9].mxu0 }
 0x104   : > { %623 = vmin.xlane.f32.xlu1 %v2451_v39  ;;  %625 = vmin.xlane.f32.xlu0 %v2459_v42 }
 0x106   : > { %v2463_v43 = vpop.f32.mrb[10].mxu0 }
 0x107   : > { %v2465_v44 = vpop.f32.mrb[11].mxu0 }
 0x108   : > { %627 = vmin.xlane.f32.xlu1 %v2457_v41  ;;  %629 = vmin.xlane.f32.xlu0 %v2465_v44 }
 0x10a   : > { %v2469_v45 = vpop.f32.mrb[12].mxu0 }
 0x10b   : > { %v2471_v46 = vpop.f32.mrb[13].mxu0 }
 0x10c   : > { %631 = vmin.xlane.f32.xlu1 %v2463_v43  ;;  %633 = vmin.xlane.f32.xlu0 %v2471_v46 }
 0x10e   : > { %v2475_v47 = vpop.f32.mrb[14].mxu0 }
 0x10f   : > { %v2477_v48 = vpop.f32.mrb[15].mxu0 }
 0x110   : > { %635 = vmin.xlane.f32.xlu1 %v2469_v45  ;;  %637 = vmin.xlane.f32.xlu0 %v2477_v48 }
 0x112   : > { %v2481_v49 = vpop.f32.mrb[16].mxu0 }
 0x113   : > { %v2483_v50 = vpop.f32.mrb[17].mxu0 }
 0x114   : > { %639 = vmin.xlane.f32.xlu1 %v2475_v47  ;;  %641 = vmin.xlane.f32.xlu0 %v2483_v50 }
 0x116   : > { %v2487_v51 = vpop.f32.mrb[18].mxu0 }
 0x117   : > { %v2489_v52 = vpop.f32.mrb[19].mxu0 }
 0x118   : > { %643 = vmin.xlane.f32.xlu1 %v2481_v49  ;;  %645 = vmin.xlane.f32.xlu0 %v2489_v52 }
 0x11a   : > { %v2493_v53 = vpop.f32.mrb[20].mxu0 }
 0x11b   : > { %v2495_v54 = vpop.f32.mrb[21].mxu0 }
 0x11c   : > { %647 = vmin.xlane.f32.xlu1 %v2487_v51  ;;  %649 = vmin.xlane.f32.xlu0 %v2495_v54 }
 0x11e   : > { %v2499_v55 = vpop.f32.mrb[22].mxu0 }
 0x11f   : > { %v2501_v56 = vpop.f32.mrb[23].mxu0 }
 0x120   : > { %651 = vmin.xlane.f32.xlu1 %v2493_v53  ;;  %653 = vmin.xlane.f32.xlu0 %v2501_v56 }
 0x122   : > { %v2505_v57 = vpop.f32.mrb[24].mxu0 }
 0x123   : > { %v2507_v58 = vpop.f32.mrb[25].mxu0 }
 0x124   : > { %655 = vmin.xlane.f32.xlu1 %v2499_v55  ;;  %657 = vmin.xlane.f32.xlu0 %v2507_v58 }
 0x126   : > { %v2511_v59 = vpop.f32.mrb[26].mxu0 }
 0x127   : > { %v2513_v60 = vpop.f32.mrb[27].mxu0 }
 0x128   : > { %659 = vmin.xlane.f32.xlu1 %v2505_v57  ;;  %661 = vmin.xlane.f32.xlu0 %v2513_v60 }
 0x12a   : > { %v2517_v61 = vpop.f32.mrb[28].mxu0 }
 0x12b   : > { %v2519_v62 = vpop.f32.mrb[29].mxu0 }
 0x12c   : > { %663 = vmin.xlane.f32.xlu1 %v2511_v59  ;;  %665 = vmin.xlane.f32.xlu0 %v2519_v62 }
 0x12e   : > { %v2523_v63 = vpop.f32.mrb[30].mxu0 }
 0x12f   : > { %v2525_v0 = vpop.f32.mrb[31].mxu0 }
 0x130   : > { %667 = vmin.xlane.f32.xlu1 %v2517_v61  ;;  %669 = vmin.xlane.f32.xlu0 %v2525_v0 }
 0x134   : > { %671 = vmin.xlane.f32.xlu1 %v2523_v63 }
 0x181   : > { %v610_v31 = vpop.xlane.xlu0 %609 }
 0x182   : > { %vm673_vm2 = vcmp.le.f32.partialorder %v2436_v34, %v610_v31 }
 0x183   : > { %v705_v26 = vsel %vm673_vm2, %v2572_v21, 128.0 }
 0x184   : > { %737 = vmin.xlane.f32.xlu0 %v705_v26 }
 0x185   : > { %v612_v28 = vpop.xlane.xlu0 %611  ;;  %v614_v22 = vpop.xlane.xlu1 %613 }
 0x186   : > { %vm674_vm3 = vcmp.le.f32.partialorder %v2434_v33, %v612_v28  ;;  %vm675_vm4 = vcmp.le.f32.partialorder %v2441_v36, %v614_v22  ;;  %v2187_v28 = vmov 1.0  }
 0x187   : > { %v706_v25 = vsel %vm674_vm3, %v2572_v21, 128.0  ;;  %v707_v29 = vsel %vm675_vm4, %v2572_v21, 128.0  ;;  %1298 = vmatprep.mubr.f32.mxu0 %v2187_v28 }
 0x188   : > { %739 = vmin.xlane.f32.xlu1 %v706_v25  ;;  %741 = vmin.xlane.f32.xlu0 %v707_v29 }
 0x189   : > { %v616_v24 = vpop.xlane.xlu1 %615  ;;  %v618_v27 = vpop.xlane.xlu0 %617 }
 0x18a   : > { %vm676_vm5 = vcmp.le.f32.partialorder %v2439_v35, %v616_v24  ;;  %vm677_vm6 = vcmp.le.f32.partialorder %v2447_v38, %v618_v27  ;;  %v911_v35 = vld [vmem:[%s3113_s2 + $0x70] sm:$0xff]  ;;  %v912_v38 = vld [vmem:[%s3113_s2 + $0x78] sm:$0xff] }
 0x18b   : > { %v708_v34 = vsel %vm676_vm5, %v2572_v21, 128.0  ;;  %v709_v23 = vsel %vm677_vm6, %v2572_v21, 128.0  ;;  %v1974_v26 = vpack.c.bf16 %v912_v38, %v911_v35 }
 0x18c   : > { %743 = vmin.xlane.f32.xlu1 %v708_v34  ;;  %745 = vmin.xlane.f32.xlu0 %v709_v23 }
 0x18d   : > { %v620_v33 = vpop.xlane.xlu1 %619  ;;  %v622_v22 = vpop.xlane.xlu0 %621  ;;  %1975 = vmatprep.subr.bf16.mxu1 %v1974_v26 }
 0x18e   : > { %vm678_vm7 = vcmp.le.f32.partialorder %v2445_v37, %v620_v33  ;;  %vm679_vm8 = vcmp.le.f32.partialorder %v2453_v40, %v622_v22  ;;  %1977 = vmatpush3.bf16.msra.mxu1 %v1974_v26 }
 0x18f   : > { %v710_v36 = vsel %vm678_vm7, %v2572_v21, 128.0  ;;  %v711_v32 = vsel %vm679_vm8, %v2572_v21, 128.0 }
 0x190   : > { %747 = vmin.xlane.f32.xlu1 %v710_v36  ;;  %749 = vmin.xlane.f32.xlu0 %v711_v32 }
 0x191   : > { %v624_v30 = vpop.xlane.xlu1 %623  ;;  %v626_v31 = vpop.xlane.xlu0 %625 }
 0x192   : > { %vm680_vm9 = vcmp.le.f32.partialorder %v2451_v39, %v624_v30  ;;  %vm681_vm10 = vcmp.le.f32.partialorder %v2459_v42, %v626_v31 }
 0x193   : > { %v712_v37 = vsel %vm680_vm9, %v2572_v21, 128.0  ;;  %v713_v40 = vsel %vm681_vm10, %v2572_v21, 128.0 }
 0x194   : > { %751 = vmin.xlane.f32.xlu1 %v712_v37  ;;  %753 = vmin.xlane.f32.xlu0 %v713_v40 }
 0x195   : > { %v628_v25 = vpop.xlane.xlu1 %627  ;;  %v630_v29 = vpop.xlane.xlu0 %629 }
 0x196   : > { %vm682_vm11 = vcmp.le.f32.partialorder %v2457_v41, %v628_v25  ;;  %vm683_vm12 = vcmp.le.f32.partialorder %v2465_v44, %v630_v29 }
 0x197   : > { %v714_v39 = vsel %vm682_vm11, %v2572_v21, 128.0  ;;  %v715_v42 = vsel %vm683_vm12, %v2572_v21, 128.0 }
 0x198   : > { %755 = vmin.xlane.f32.xlu1 %v714_v39  ;;  %757 = vmin.xlane.f32.xlu0 %v715_v42 }
 0x199   : > { %v632_v24 = vpop.xlane.xlu1 %631  ;;  %v634_v27 = vpop.xlane.xlu0 %633 }
 0x19a   : > { %vm684_vm13 = vcmp.le.f32.partialorder %v2463_v43, %v632_v24  ;;  %vm685_vm14 = vcmp.le.f32.partialorder %v2471_v46, %v634_v27 }
 0x19b   : > { %v716_v34 = vsel %vm684_vm13, %v2572_v21, 128.0  ;;  %v717_v23 = vsel %vm685_vm14, %v2572_v21, 128.0 }
 0x19c   : > { %759 = vmin.xlane.f32.xlu1 %v716_v34  ;;  %761 = vmin.xlane.f32.xlu0 %v717_v23 }
 0x19d   : > { %v636_v41 = vpop.xlane.xlu1 %635  ;;  %v638_v44 = vpop.xlane.xlu0 %637 }
 0x19e   : > { %vm686_vm15 = vcmp.le.f32.partialorder %v2469_v45, %v636_v41  ;;  %vm687_vm0 = vcmp.le.f32.partialorder %v2477_v48, %v638_v44 }
 0x19f   : > { %v718_v33 = vsel %vm686_vm15, %v2572_v21, 128.0  ;;  %v719_v22 = vsel %vm687_vm0, %v2572_v21, 128.0 }
 0x1a0   : > { %763 = vmin.xlane.f32.xlu1 %v718_v33  ;;  %765 = vmin.xlane.f32.xlu0 %v719_v22 }
 0x1a1   : > { %v640_v43 = vpop.xlane.xlu1 %639  ;;  %v642_v46 = vpop.xlane.xlu0 %641 }
 0x1a2   : > { %vm688_vm2 = vcmp.le.f32.partialorder %v2475_v47, %v640_v43  ;;  %vm689_vm3 = vcmp.le.f32.partialorder %v2483_v50, %v642_v46 }
 0x1a3   : > { %v720_v36 = vsel %vm688_vm2, %v2572_v21, 128.0  ;;  %v721_v32 = vsel %vm689_vm3, %v2572_v21, 128.0 }
 0x1a4   : > { %767 = vmin.xlane.f32.xlu1 %v720_v36  ;;  %769 = vmin.xlane.f32.xlu0 %v721_v32 }
 0x1a5   : > { %v644_v45 = vpop.xlane.xlu1 %643  ;;  %v646_v48 = vpop.xlane.xlu0 %645 }
 0x1a6   : > { %vm690_vm4 = vcmp.le.f32.partialorder %v2481_v49, %v644_v45  ;;  %vm691_vm5 = vcmp.le.f32.partialorder %v2489_v52, %v646_v48 }
 0x1a7   : > { %v722_v35 = vsel %vm690_vm4, %v2572_v21, 128.0  ;;  %v723_v38 = vsel %vm691_vm5, %v2572_v21, 128.0 }
 0x1a8   : > { %771 = vmin.xlane.f32.xlu1 %v722_v35  ;;  %773 = vmin.xlane.f32.xlu0 %v723_v38 }
 0x1a9   : > { %v648_v47 = vpop.xlane.xlu1 %647  ;;  %v650_v50 = vpop.xlane.xlu0 %649 }
 0x1aa   : > { %vm692_vm6 = vcmp.le.f32.partialorder %v2487_v51, %v648_v47  ;;  %vm693_vm7 = vcmp.le.f32.partialorder %v2495_v54, %v650_v50 }
 0x1ab   : > { %v724_v30 = vsel %vm692_vm6, %v2572_v21, 128.0  ;;  %v725_v31 = vsel %vm693_vm7, %v2572_v21, 128.0 }
 0x1ac   : > { %775 = vmin.xlane.f32.xlu1 %v724_v30  ;;  %777 = vmin.xlane.f32.xlu0 %v725_v31  ;;  %v2188_v31 = vmov 1.0|1.0  }
 0x1ad   : > { %v652_v49 = vpop.xlane.xlu1 %651  ;;  %v654_v52 = vpop.xlane.xlu0 %653 }
 0x1ae   : > { %vm694_vm8 = vcmp.le.f32.partialorder %v2493_v53, %v652_v49  ;;  %vm695_vm9 = vcmp.le.f32.partialorder %v2501_v56, %v654_v52 }
 0x1af   : > { %v726_v26 = vsel %vm694_vm8, %v2572_v21, 128.0  ;;  %v727_v37 = vsel %vm695_vm9, %v2572_v21, 128.0 }
 0x1b0   : > { %779 = vmin.xlane.f32.xlu1 %v726_v26  ;;  %781 = vmin.xlane.f32.xlu0 %v727_v37 }
 0x1b1   : > { %v656_v51 = vpop.xlane.xlu1 %655  ;;  %v658_v54 = vpop.xlane.xlu0 %657 }
 0x1b2   : > { %vm696_vm10 = vcmp.le.f32.partialorder %v2499_v55, %v656_v51  ;;  %vm697_vm11 = vcmp.le.f32.partialorder %v2507_v58, %v658_v54 }
 0x1b3   : > { %v728_v40 = vsel %vm696_vm10, %v2572_v21, 128.0  ;;  %v729_v25 = vsel %vm697_vm11, %v2572_v21, 128.0 }
 0x1b4   : > { %783 = vmin.xlane.f32.xlu1 %v728_v40  ;;  %785 = vmin.xlane.f32.xlu0 %v729_v25 }
 0x1b5   : > { %v660_v53 = vpop.xlane.xlu1 %659  ;;  %v662_v56 = vpop.xlane.xlu0 %661 }
 0x1b6   : > { %vm698_vm12 = vcmp.le.f32.partialorder %v2505_v57, %v660_v53  ;;  %vm699_vm13 = vcmp.le.f32.partialorder %v2513_v60, %v662_v56 }
 0x1b7   : > { %v730_v29 = vsel %vm698_vm12, %v2572_v21, 128.0  ;;  %v731_v39 = vsel %vm699_vm13, %v2572_v21, 128.0 }
 0x1b8   : > { %787 = vmin.xlane.f32.xlu1 %v730_v29  ;;  %789 = vmin.xlane.f32.xlu0 %v731_v39 }
 0x1b9   : > { %v664_v55 = vpop.xlane.xlu1 %663  ;;  %v666_v58 = vpop.xlane.xlu0 %665 }
 0x1ba   : > { %vm700_vm14 = vcmp.le.f32.partialorder %v2511_v59, %v664_v55  ;;  %vm701_vm15 = vcmp.le.f32.partialorder %v2519_v62, %v666_v58 }
 0x1bb   : > { %v732_v42 = vsel %vm700_vm14, %v2572_v21, 128.0  ;;  %v733_v24 = vsel %vm701_vm15, %v2572_v21, 128.0 }
 0x1bc   : > { %791 = vmin.xlane.f32.xlu1 %v732_v42  ;;  %793 = vmin.xlane.f32.xlu0 %v733_v24 }
 0x1bd   : > { %v668_v57 = vpop.xlane.xlu1 %667  ;;  %v670_v60 = vpop.xlane.xlu0 %669 }
 0x1be   : > { %vm702_vm0 = vcmp.le.f32.partialorder %v2517_v61, %v668_v57  ;;  %vm703_vm2 = vcmp.le.f32.partialorder %v2525_v0, %v670_v60 }
 0x1bf   : > { %v734_v27 = vsel %vm702_vm0, %v2572_v21, 128.0  ;;  %v735_v34 = vsel %vm703_vm2, %v2572_v21, 128.0 }
 0x1c0   : > { %795 = vmin.xlane.f32.xlu1 %v734_v27  ;;  %797 = vmin.xlane.f32.xlu0 %v735_v34 }
 0x1c1   : > { %v672_v59 = vpop.xlane.xlu1 %671 }
 0x1c2   : > { %vm704_vm3 = vcmp.le.f32.partialorder %v2523_v63, %v672_v59 }
 0x1c3   : > { %v736_v62 = vsel %vm704_vm3, %v2572_v21, 128.0 }
 0x1c4   : > { %799 = vmin.xlane.f32.xlu1 %v736_v62 }
 0x211   : > { %v738_v23 = vpop.xlane.xlu0 %737 }
 0x212   : > { %vm801_vm4 = vcmp.eq.f32.partialorder %v2572_v21, %v738_v23 }
 0x213   : > { %1898 = vmatprep.mubr.msk.f32.mxu1 %vm801_vm4, %v2187_v28 }
 0x215   : > { %v740_v61 = vpop.xlane.xlu1 %739  ;;  %v2649_v0 = vpop.xlane.xlu0 %741 }
 0x216   : > { %vm802_vm5 = vcmp.eq.f32.partialorder %v2572_v21, %v740_v61  ;;  %vm803_vm6 = vcmp.eq.f32.partialorder %v2572_v21, %v2649_v0 }
 0x217   : > { %1899 = vmatmul.mubr.msk.f32.vlgmr.msra.gmra.mrb[0].mxu1 %vm802_vm5, %v2187_v28 }
 0x218   : > { %1901 = vmatprep.mubr.msk.f32.mxu1 %vm803_vm6, %v2187_v28 }
 0x219   : > { %v744_v63 = vpop.xlane.xlu1 %743  ;;  %v2661_v41 = vpop.xlane.xlu0 %745 }
 0x21a   : > { %vm804_vm7 = vcmp.eq.f32.partialorder %v2572_v21, %v744_v63  ;;  %vm805_vm8 = vcmp.eq.f32.partialorder %v2572_v21, %v2661_v41 }
 0x21b   : > { %1902 = vmatmul.mubr.msk.f32.gmra.mrb[2].mxu1 %vm804_vm7, %v2187_v28 }
 0x21c   : > { %1904 = vmatprep.mubr.msk.f32.mxu1 %vm805_vm8, %v2187_v28 }
 0x21d   : > { %v2673_v44 = vpop.xlane.xlu1 %747  ;;  %v2675_v33 = vpop.xlane.xlu0 %749 }
 0x21e   : > { %vm806_vm9 = vcmp.eq.f32.partialorder %v2572_v21, %v2673_v44  ;;  %vm807_vm10 = vcmp.eq.f32.partialorder %v2572_v21, %v2675_v33 }
 0x21f   : > { %1905 = vmatmul.mubr.msk.f32.gmra.mrb[4].mxu1 %vm806_vm9, %v2187_v28 }
 0x220   : > { %1907 = vmatprep.mubr.msk.f32.mxu1 %vm807_vm10, %v2187_v28 }
 0x221   : > { %v2689_v22 = vpop.xlane.xlu1 %751  ;;  %v2691_v43 = vpop.xlane.xlu0 %753 }
 0x222   : > { %vm808_vm11 = vcmp.eq.f32.partialorder %v2572_v21, %v2689_v22  ;;  %vm809_vm12 = vcmp.eq.f32.partialorder %v2572_v21, %v2691_v43 }
 0x223   : > { %1908 = vmatmul.mubr.msk.f32.gmra.mrb[6].mxu1 %vm808_vm11, %v2187_v28 }
 0x224   : > { %1910 = vmatprep.mubr.msk.f32.mxu1 %vm809_vm12, %v2187_v28 }
 0x225   : > { %v2705_v46 = vpop.xlane.xlu1 %755  ;;  %v2707_v36 = vpop.xlane.xlu0 %757 }
 0x226   : > { %vm3133_vm13 = vcmp.eq.f32.partialorder %v2572_v21, %v2705_v46  ;;  %vm3131_vm14 = vcmp.eq.f32.partialorder %v2572_v21, %v2707_v36 }
 0x227   : > { %1911 = vmatmul.mubr.msk.f32.gmra.mrb[8].mxu1 %vm3133_vm13, %v2187_v28 }
 0x228   : > { %1913 = vmatprep.mubr.msk.f32.mxu1 %vm3131_vm14, %v2187_v28  ;;  %vm1980_vm14 = vmpackc.low %vm802_vm5, %vm801_vm4 }
 0x229   : > { %v2721_v32 = vpop.xlane.xlu1 %759  ;;  %v2723_v45 = vpop.xlane.xlu0 %761  ;;  %vm1984_vm4 = vmpackc.low %vm804_vm7, %vm803_vm6 }
 0x22a   : > { %vm3130_vm15 = vcmp.eq.f32.partialorder %v2572_v21, %v2721_v32  ;;  %vm3127_vm0 = vcmp.eq.f32.partialorder %v2572_v21, %v2723_v45 }
 0x22b   : > { %1914 = vmatmul.mubr.msk.f32.gmra.mrb[10].mxu1 %vm3130_vm15, %v2187_v28 }
 0x22c   : > { %1916 = vmatprep.mubr.msk.f32.mxu1 %vm3127_vm0, %v2187_v28 }
 0x22d   : > { %v2737_v48 = vpop.xlane.xlu1 %763  ;;  %v2739_v35 = vpop.xlane.xlu0 %765 }
 0x22e   : > { %vm3128_vm2 = vcmp.eq.f32.partialorder %v2572_v21, %v2737_v48  ;;  %vm3129_vm3 = vcmp.eq.f32.partialorder %v2572_v21, %v2739_v35 }
 0x22f   : > { %1917 = vmatmul.mubr.msk.f32.gmra.mrb[12].mxu1 %vm3128_vm2, %v2187_v28 }
 0x230   : > { %1919 = vmatprep.mubr.msk.f32.mxu1 %vm3129_vm3, %v2187_v28 }
 0x231   : > { %v2753_v38 = vpop.xlane.xlu1 %767  ;;  %v770_v47 = vpop.xlane.xlu0 %769 }
 0x232   : > { %vm3132_vm1 = vcmp.eq.f32.partialorder %v2572_v21, %v2753_v38  ;;  %vm817_vm0 = vcmp.eq.f32.partialorder %v2572_v21, %v770_v47 }
 0x233   : > { %1920 = vmatmul.mubr.msk.f32.gmra.mrb[14].mxu1 %vm3132_vm1, %v2187_v28 }
 0x234   : > { %1922 = vmatprep.mubr.msk.f32.mxu1 %vm817_vm0, %v2187_v28 }
 0x235   : > { %v772_v50 = vpop.xlane.xlu1 %771  ;;  %v774_v30 = vpop.xlane.xlu0 %773 }
 0x236   : > { %vm818_vm2 = vcmp.eq.f32.partialorder %v2572_v21, %v772_v50  ;;  %vm819_vm3 = vcmp.eq.f32.partialorder %v2572_v21, %v774_v30 }
 0x237   : > { %vm1978_vm15 = vmpackc.low %vm818_vm2, %vm817_vm0  ;;  %1923 = vmatmul.mubr.msk.f32.gmra.mrb[16].mxu1 %vm818_vm2, %v2187_v28 }
 0x238   : > { %1925 = vmatprep.mubr.msk.f32.mxu1 %vm819_vm3, %v2187_v28  ;;  %1979 = vmatprep.subr.msk.bf16.mxu0 %vm1978_vm15, %v2188_v31 }
 0x239   : > { %v776_v49 = vpop.xlane.xlu1 %775  ;;  %1981 = vmatpush3.bf16.msk.msra.mxu0 %vm1980_vm14, %v2188_v31  ;;  %v778_v52 = vpop.xlane.xlu0 %777 }
 0x23a   : > { %vm820_vm1 = vcmp.eq.f32.partialorder %v2572_v21, %v776_v49  ;;  %vm821_vm0 = vcmp.eq.f32.partialorder %v2572_v21, %v778_v52 }
 0x23b   : > { %vm1982_vm13 = vmpackc.low %vm820_vm1, %vm819_vm3  ;;  %1926 = vmatmul.mubr.msk.f32.gmra.mrb[18].mxu1 %vm820_vm1, %v2187_v28 }
 0x23c   : > { %1928 = vmatprep.mubr.msk.f32.mxu1 %vm821_vm0, %v2187_v28  ;;  %1983 = vmatprep.subr.msk.bf16.mxu0 %vm1982_vm13, %v2188_v31  ;;  %vm1988_vm1 = vmpackc.low %vm806_vm9, %vm805_vm8 }
 0x23d   : > { %v780_v26 = vpop.xlane.xlu1 %779  ;;  %1985 = vmatpush3.bf16.msk.msra.mxu0 %vm1984_vm4, %v2188_v31  ;;  %v782_v37 = vpop.xlane.xlu0 %781  ;;  %vm1992_vm8 = vmpackc.low %vm808_vm11, %vm807_vm10  ;;  %vm3145_vm10 = vcmp.eq.f32.partialorder %v2572_v21, %v2705_v46 }
 0x23e   : > { %vm822_vm5 = vcmp.eq.f32.partialorder %v2572_v21, %v780_v26  ;;  %vm823_vm14 = vcmp.eq.f32.partialorder %v2572_v21, %v782_v37  ;;  %vm1996_vm11 = vmpackc.low %vm3145_vm10, %vm809_vm12  ;;  %vm3147_vm12 = vcmp.eq.f32.partialorder %v2572_v21, %v2721_v32  ;;  %vm3150_vm10 = vcmp.eq.f32.partialorder %v2572_v21, %v2739_v35 }
 0x23f   : > { %vm1986_vm15 = vmpackc.low %vm822_vm5, %vm821_vm0  ;;  %1929 = vmatmul.mubr.msk.f32.gmra.mrb[20].mxu1 %vm822_vm5, %v2187_v28 }
 0x240   : > { %1931 = vmatprep.mubr.msk.f32.mxu1 %vm823_vm14, %v2187_v28  ;;  %1987 = vmatprep.subr.msk.bf16.mxu0 %vm1986_vm15, %v2188_v31 }
 0x241   : > { %v784_v51 = vpop.xlane.xlu1 %783  ;;  %1989 = vmatpush3.bf16.msk.msra.mxu0 %vm1988_vm1, %v2188_v31  ;;  %v786_v54 = vpop.xlane.xlu0 %785 }
 0x242   : > { %vm824_vm6 = vcmp.eq.f32.partialorder %v2572_v21, %v784_v51  ;;  %vm825_vm7 = vcmp.eq.f32.partialorder %v2572_v21, %v786_v54 }
 0x243   : > { %vm1990_vm13 = vmpackc.low %vm824_vm6, %vm823_vm14  ;;  %1932 = vmatmul.mubr.msk.f32.gmra.mrb[22].mxu1 %vm824_vm6, %v2187_v28  ;;  %vm3146_vm14 = vcmp.eq.f32.partialorder %v2572_v21, %v2707_v36 }
 0x244   : > { %1934 = vmatprep.mubr.msk.f32.mxu1 %vm825_vm7, %v2187_v28  ;;  %1991 = vmatprep.subr.msk.bf16.mxu0 %vm1990_vm13, %v2188_v31  ;;  %vm2000_vm15 = vmpackc.low %vm3147_vm12, %vm3146_vm14  ;;  %vm3148_vm13 = vcmp.eq.f32.partialorder %v2572_v21, %v2723_v45 }
 0x245   : > { %v788_v40 = vpop.xlane.xlu1 %787  ;;  %1993 = vmatpush3.bf16.msk.msra.mxu0 %vm1992_vm8, %v2188_v31  ;;  %v790_v25 = vpop.xlane.xlu0 %789  ;;  %vm3149_vm8 = vcmp.eq.f32.partialorder %v2572_v21, %v2737_v48 }
 0x246   : > { %vm826_vm9 = vcmp.eq.f32.partialorder %v2572_v21, %v788_v40  ;;  %vm827_vm2 = vcmp.eq.f32.partialorder %v2572_v21, %v790_v25 }
 0x247   : > { %vm1994_vm3 = vmpackc.low %vm826_vm9, %vm825_vm7  ;;  %1935 = vmatmul.mubr.msk.f32.gmra.mrb[24].mxu1 %vm826_vm9, %v2187_v28 }
 0x248   : > { %1937 = vmatprep.mubr.msk.f32.mxu1 %vm827_vm2, %v2187_v28  ;;  %1995 = vmatprep.subr.msk.bf16.mxu0 %vm1994_vm3, %v2188_v31  ;;  %vm2004_vm9 = vmpackc.low %vm3149_vm8, %vm3148_vm13 }
 0x249   : > { %v792_v53 = vpop.xlane.xlu1 %791  ;;  %1997 = vmatpush3.bf16.msk.msra.mxu0 %vm1996_vm11, %v2188_v31  ;;  %v794_v56 = vpop.xlane.xlu0 %793  ;;  %vm3151_vm11 = vcmp.eq.f32.partialorder %v2572_v21, %v2753_v38 }
 0x24a   : > { %vm828_vm0 = vcmp.eq.f32.partialorder %v2572_v21, %v792_v53  ;;  %vm829_vm4 = vcmp.eq.f32.partialorder %v2572_v21, %v794_v56 }
 0x24b   : > { %vm1998_vm5 = vmpackc.low %vm828_vm0, %vm827_vm2  ;;  %1938 = vmatmul.mubr.msk.f32.gmra.mrb[26].mxu1 %vm828_vm0, %v2187_v28 }
 0x24c   : > { %1940 = vmatprep.mubr.msk.f32.mxu1 %vm829_vm4, %v2187_v28  ;;  %1999 = vmatprep.subr.msk.bf16.mxu0 %vm1998_vm5, %v2188_v31  ;;  %vm2008_vm0 = vmpackc.low %vm3151_vm11, %vm3150_vm10 }
 0x24d   : > { %v796_v29 = vpop.xlane.xlu1 %795  ;;  %2001 = vmatpush3.bf16.msk.msra.mxu0 %vm2000_vm15, %v2188_v31  ;;  %v798_v39 = vpop.xlane.xlu0 %797 }
 0x24e   : > { %vm830_vm1 = vcmp.eq.f32.partialorder %v2572_v21, %v796_v29  ;;  %vm831_vm6 = vcmp.eq.f32.partialorder %v2572_v21, %v798_v39 }
 0x24f   : > { %vm2002_vm7 = vmpackc.low %vm830_vm1, %vm829_vm4  ;;  %1941 = vmatmul.mubr.msk.f32.gmra.mrb[28].mxu1 %vm830_vm1, %v2187_v28  ;;  %vm3152_vm4 = vcmask 39936  }
 0x250   : > { %1943 = vmatprep.mubr.msk.f32.mxu1 %vm831_vm6, %v2187_v28  ;;  %2003 = vmatprep.subr.msk.bf16.mxu0 %vm2002_vm7, %v2188_v31  ;;  %vm3153_vm5 = vmmov %vm3152_vm4 }
 0x251   : > { %v800_v55 = vpop.xlane.xlu1 %799  ;;  %2005 = vmatpush3.bf16.msk.msra.mxu0 %vm2004_vm9, %v2188_v31  ;;  %vm3154_vm14 = vmmov %vm3152_vm4 }
 0x252   : > { %vm832_vm2 = vcmp.eq.f32.partialorder %v2572_v21, %v800_v55  ;;  %vm3155_vm12 = vmmov %vm3152_vm4 }
 0x253   : > { %vm2006_vm3 = vmpackc.low %vm832_vm2, %vm831_vm6  ;;  %1944 = vmatmul.mubr.msk.f32.gmra.mrb[30].mxu1 %vm832_vm2, %v2187_v28 }
 0x254   : > { %2007 = vmatprep.subr.msk.bf16.mxu0 %vm2006_vm3, %v2188_v31  ;;  %1369 = vmatprep.mubr.f32.mxu1 %v2187_v28  ;;  %vm3156_vm15 = vmmov %vm3152_vm4 }
 0x255   : > { %2009 = vmatpush3.bf16.msk.msra.mxu0 %vm2008_vm0, %v2188_v31  ;;  %vm3157_vm1 = vmmov %vm3152_vm4 }
 0x256   : > { %vm3158_vm6 = vmmov %vm3157_vm1 }
 0x257   : > { %vm3159_vm7 = vmmov %vm3157_vm1 }
 0x258   : > { %1299 = vmatmul.mubr.f32.vlgmr.msra.gmra.mrb[32].mxu0 %v2187_v28  ;;  %vm3160_vm13 = vmmov %vm3157_vm1 }
 0x259   : > { %vm3161_vm8 = vmmov %vm3157_vm1 }
 0x25a   : > { %vm3162_vm9 = vmmov %vm3157_vm1 }
 0x25b   : > { %vm3163_vm2 = vmmov %vm3157_vm1 }
 0x25c   : > { %vm3164_vm3 = vmmov %vm3157_vm1 }
 0x25d   : > { %vm3165_vm10 = vmmov %vm3157_vm1 }
 0x25e   : > { %vm3166_vm11 = vmmov %vm3157_vm1 }
 0x25f   : > { %vm3167_vm0 = vmmov %vm3157_vm1 }
 0x2ea   : > { %v1900_v21 = vpop.f32.mrb[0].mxu1 }
 0x2eb   : > { %1139 = vst.msk [vmem:[%s2861_s26 + $0x8] sm:$0xff] %vm3152_vm4, %v1900_v21  ;;  %v1171_v58 = vsub.f32 %v1900_v21, %v2287_v2  ;;  %v979_v42 = vpop.f32.mrb[1].mxu1  ;;  %vm3168_vm4 = vmmov %vm3167_vm0 }
 0x2ec   : > { %1138 = vst.msk [vmem:[%s2861_s26] sm:$0xff] %vm3153_vm5, %v979_v42  ;;  %v1170_v24 = vsub.f32 %v979_v42, %v2284_v1  ;;  %vm3169_vm5 = vmmov %vm3167_vm0 }
 0x2ed   : > { %v2869_v57 = vmul.f32 %v1171_v58, %v1171_v58 }
 0x2ee   : > { %v2871_v60 = vmul.f32 %v1170_v24, %v1170_v24  ;;  %v1903_v27 = vpop.f32.mrb[2].mxu1 }
 0x2ef   : > { %1141 = vst.msk [vmem:[%s2861_s26 + $0x18] sm:$0xff] %vm3154_vm14, %v1903_v27  ;;  %v1173_v34 = vsub.f32 %v1903_v27, %v2299_v4  ;;  %v989_v59 = vpop.f32.mrb[3].mxu1  ;;  %vm3170_vm14 = vmmov %vm3167_vm0 }
 0x2f0   : > { %v2012_v2 = vpack.c.bf16 %v2869_v57, %v2871_v60  ;;  %1140 = vst.msk [vmem:[%s2861_s26 + $0x10] sm:$0xff] %vm3155_vm12, %v989_v59  ;;  %v1172_v62 = vsub.f32 %v989_v59, %v2290_v3  ;;  %vm3171_vm12 = vmmov %vm3167_vm0  ;;  %v3179_v57 = vld [vmem:[#allocation10_spill] sm:$0xff] }
 0x2f1   : > { %v2881_v1 = vmul.f32 %v1173_v34, %v1173_v34 }
 0x2f2   : > { %v2883_v23 = vmul.f32 %v1172_v62, %v1172_v62  ;;  %v1906_v61 = vpop.f32.mrb[4].mxu1 }
 0x2f3   : > { %1143 = vst.msk [vmem:[%s2861_s26 + $0x28] sm:$0xff] %vm3156_vm15, %v1906_v61  ;;  %v1175_v0 = vsub.f32 %v1906_v61, %v2309_v6  ;;  %v999_v4 = vpop.f32.mrb[5].mxu1  ;;  %vm3172_vm15 = vmmov %vm3167_vm0 }
 0x2f4   : > { %v2016_v63 = vpack.c.bf16 %v2881_v1, %v2883_v23  ;;  %1142 = vst.msk [vmem:[%s2861_s26 + $0x20] sm:$0xff] %vm3157_vm1, %v999_v4  ;;  %v1174_v41 = vsub.f32 %v999_v4, %v2302_v5  ;;  %vm3174_vm1 = vmmov %vm3167_vm0  ;;  %v3183_v1 = vld [vmem:[#allocation12_spill] sm:$0xff] }
 0x2f5   : > { %v2893_v3 = vmul.f32 %v1175_v0, %v1175_v0 }
 0x2f6   : > { %v2895_v44 = vmul.f32 %v1174_v41, %v1174_v41  ;;  %v1909_v33 = vpop.f32.mrb[6].mxu1 }
 0x2f7   : > { %1145 = vst.msk [vmem:[%s2861_s26 + $0x38] sm:$0xff] %vm3158_vm6, %v1909_v33  ;;  %v1177_v22 = vsub.f32 %v1909_v33, %v2319_v8  ;;  %v1009_v6 = vpop.f32.mrb[7].mxu1  ;;  %vm3176_vm6 = vmmov %vm3167_vm0 }
 0x2f8   : > { %v2020_v43 = vpack.c.bf16 %v2893_v3, %v2895_v44  ;;  %1144 = vst.msk [vmem:[%s2861_s26 + $0x30] sm:$0xff] %vm3159_vm7, %v1009_v6  ;;  %v1176_v46 = vsub.f32 %v1009_v6, %v2312_v7  ;;  %vm3178_vm7 = vmmov %vm3167_vm0  ;;  %v3187_v3 = vld [vmem:[#allocation14_spill] sm:$0xff] }
 0x2f9   : > { %v2905_v5 = vmul.f32 %v1177_v22, %v1177_v22 }
 0x2fa   : > { %v2907_v36 = vmul.f32 %v1176_v46, %v1176_v46  ;;  %v1912_v32 = vpop.f32.mrb[8].mxu1 }
 0x2fb   : > { %1147 = vst.msk [vmem:[%s2861_s26 + $0x48] sm:$0xff] %vm3160_vm13, %v1912_v32  ;;  %v1179_v45 = vsub.f32 %v1912_v32, %v2329_v10  ;;  %v1019_v8 = vpop.f32.mrb[9].mxu1  ;;  %v3177_v32 = vld [vmem:[#allocation11_spill] sm:$0xff]  ;;  %vm3180_vm13 = vmmov %vm3167_vm0 }
 0x2fc   : > { %v2024_v48 = vpack.c.bf16 %v2905_v5, %v2907_v36  ;;  %1146 = vst.msk [vmem:[%s2861_s26 + $0x40] sm:$0xff] %vm3161_vm8, %v1019_v8  ;;  %v1178_v35 = vsub.f32 %v1019_v8, %v2322_v9  ;;  %vm3182_vm8 = vmmov %vm3167_vm0  ;;  %v2088_v5 = vld [vmem:[%s2281_s11 + $0xe0] sm:$0xff] }
 0x2fd   : > { %v2917_v7 = vmul.f32 %v1179_v45, %v1179_v45 }
 0x2fe   : > { %v2919_v38 = vmul.f32 %v1178_v35, %v1178_v35  ;;  %v1915_v47 = vpop.f32.mrb[10].mxu1 }
 0x2ff   : > { %1149 = vst.msk [vmem:[%s2861_s26 + $0x58] sm:$0xff] %vm3162_vm9, %v1915_v47  ;;  %v1181_v50 = vsub.f32 %v1915_v47, %v2339_v12  ;;  %v1029_v10 = vpop.f32.mrb[11].mxu1  ;;  %vm3184_vm9 = vmmov %vm3167_vm0 }
 0x300   : > { %v2028_v30 = vpack.c.bf16 %v2917_v7, %v2919_v38  ;;  %1148 = vst.msk [vmem:[%s2861_s26 + $0x50] sm:$0xff] %vm3163_vm2, %v1029_v10  ;;  %v1180_v31 = vsub.f32 %v1029_v10, %v2332_v11  ;;  %v3181_v10 = vld [vmem:[#allocation13_spill] sm:$0xff]  ;;  %vm3186_vm2 = vmmov %vm3167_vm0 }
 0x301   : > { %v2929_v9 = vmul.f32 %v1181_v50, %v1181_v50  ;;  %v2090_v7 = vld [vmem:[%s2281_s11 + $0xf0] sm:$0xff] }
 0x302   : > { %v2931_v49 = vmul.f32 %v1180_v31, %v1180_v31  ;;  %v1918_v52 = vpop.f32.mrb[12].mxu1 }
 0x303   : > { %1151 = vst.msk [vmem:[%s2861_s26 + $0x68] sm:$0xff] %vm3164_vm3, %v1918_v52  ;;  %v1183_v26 = vsub.f32 %v1918_v52, %v2349_v14  ;;  %v1039_v12 = vpop.f32.mrb[13].mxu1  ;;  %vm3188_vm3 = vmmov %vm3167_vm0 }
 0x304   : > { %v2032_v37 = vpack.c.bf16 %v2929_v9, %v2931_v49  ;;  %1150 = vst.msk [vmem:[%s2861_s26 + $0x60] sm:$0xff] %vm3165_vm10, %v1039_v12  ;;  %v1182_v51 = vsub.f32 %v1039_v12, %v2342_v13  ;;  %vm3190_vm10 = vmmov %vm3167_vm0 }
 0x305   : > { %v2941_v11 = vmul.f32 %v1183_v26, %v1183_v26 }
 0x306   : > { %v2943_v54 = vmul.f32 %v1182_v51, %v1182_v51  ;;  %v1921_v40 = vpop.f32.mrb[14].mxu1 }
 0x307   : > { %1153 = vst.msk [vmem:[%s2861_s26 + $0x78] sm:$0xff] %vm3166_vm11, %v1921_v40  ;;  %v1185_v25 = vsub.f32 %v1921_v40, %v2359_v16  ;;  %v1049_v14 = vpop.f32.mrb[15].mxu1  ;;  %v3185_v40 = vld [vmem:[#allocation15_spill] sm:$0xff]  ;;  %vm3191_vm11 = vmmov %vm3167_vm0 }
 0x308   : > { %v2036_v53 = vpack.c.bf16 %v2941_v11, %v2943_v54  ;;  %1152 = vst.msk [vmem:[%s2861_s26 + $0x70] sm:$0xff] %vm3167_vm0, %v1049_v14  ;;  %v1184_v56 = vsub.f32 %v1049_v14, %v2352_v15 }
 0x309   : > { %v2953_v13 = vmul.f32 %v1185_v25, %v1185_v25 }
 0x30a   : > { %v2955_v29 = vmul.f32 %v1184_v56, %v1184_v56  ;;  %v1924_v39 = vpop.f32.mrb[16].mxu1 }
 0x30b   : > { %1155 = vst.msk [vmem:[%s2861_s26 + $0x88] sm:$0xff] %vm3168_vm4, %v1924_v39  ;;  %v1187_v55 = vsub.f32 %v1924_v39, %v2369_v18  ;;  %v1059_v16 = vpop.f32.mrb[17].mxu1 }
 0x30c   : > { %v2040_v21 = vpack.c.bf16 %v2953_v13, %v2955_v29  ;;  %1154 = vst.msk [vmem:[%s2861_s26 + $0x80] sm:$0xff] %vm3169_vm5, %v1059_v16  ;;  %v1186_v58 = vsub.f32 %v1059_v16, %v2362_v17  ;;  %v3173_v17 = vld [vmem:[#allocation9_spill] sm:$0xff]  ;;  %v3189_v16 = vld [vmem:[#allocation16_spill] sm:$0xff] }
 0x30d   : > { %v1219_v15 = vmul.f32 %v1187_v55, %v1187_v55 }
 0x30e   : > { %v1218_v42 = vmul.f32 %v1186_v58, %v1186_v58  ;;  %v1927_v24 = vpop.f32.mrb[18].mxu1 }
 0x30f   : > { %1157 = vst.msk [vmem:[%s2861_s26 + $0x98] sm:$0xff] %vm3170_vm14, %v1927_v24  ;;  %v1189_v27 = vsub.f32 %v1927_v24, %v2379_v20  ;;  %v1069_v34 = vpop.f32.mrb[19].mxu1  ;;  %v3175_v20 = vld [vmem:[#allocation8_spill] sm:$0xff] }
 0x310   : > { %1156 = vst.msk [vmem:[%s2861_s26 + $0x90] sm:$0xff] %vm3171_vm12, %v1069_v34  ;;  %v1188_v18 = vsub.f32 %v1069_v34, %v2372_v19  ;;  %v2010_v59 = vpack.c.bf16 %v1219_v15, %v1218_v42  ;;  %v2089_v34 = vld [vmem:[%s2281_s11 + $0xf8] sm:$0xff]  ;;  %s228_s11 = scalar_lea.vmem [#allocation2], %s3033_s7 }
 0x311   : > { %v1221_v62 = vmul.f32 %v1189_v27, %v1189_v27  ;;  %s1403_s10 = sshll.u32 %s228_s11, 4  ;;  %s1404_s10 = int_to_ptr.vmem [resolvable:$true] %s1403_s10 }
 0x312   : > { %v1220_v61 = vmul.f32 %v1188_v18, %v1188_v18  ;;  %v1930_v0 = vpop.f32.mrb[20].mxu1  ;;  %2011 = vmatprep.subr.bf16.mxu1 %v2010_v59  ;;  %s2091_s13 = scalar_lea.vmem %s1404_s10, 16  ;;  %p2098_p0 = scmp.lt.s32.totalorder %s1404_s10, %s2096_s15 }
 0x313   : > { %1159 = vst.msk [vmem:[%s2861_s26 + $0xa8] sm:$0xff] %vm3172_vm15, %v1930_v0  ;;  %v1191_v4 = vsub.f32 %v1930_v0, %v3173_v17  ;;  %v1079_v41 = vpop.f32.mrb[21].mxu1  ;;  %2013 = vmatpush3.bf16.msra.mxu1 %v2012_v2  ;;  %p2092_p11 = scmp.ne.s32.totalorder %s1404_s10, %s2091_s13  ;;  %p2099_p1 = scmp.lt.s32.totalorder %s2097_s16, %s2091_s13 }
 0x314   : > { %1158 = vst.msk [vmem:[%s2861_s26 + $0xa0] sm:$0xff] %vm3174_vm1, %v1079_v41  ;;  %v1190_v19 = vsub.f32 %v1079_v41, %v3175_v20  ;;  %v2014_v33 = vpack.c.bf16 %v1221_v62, %v1220_v61 }
 0x315   : > { %v1223_v22 = vmul.f32 %v1191_v4, %v1191_v4  ;;  %p2093_p12 = pnand %p2092_p11, %p2259_p5  ;;  %p2100_p2 = por %p2099_p1, %p2098_p0 }
 0x316   : > { %v1222_v6 = vmul.f32 %v1190_v19, %v1190_v19  ;;  %v1933_v46 = vpop.f32.mrb[22].mxu1  ;;  %2015 = vmatprep.subr.bf16.mxu1 %v2014_v33 }
 0x317   : > { %1161 = vst.msk [vmem:[%s2861_s26 + $0xb8] sm:$0xff] %vm3176_vm6, %v1933_v46  ;;  %v1193_v45 = vsub.f32 %v1933_v46, %v3177_v32  ;;  %v1089_v8 = vpop.f32.mrb[23].mxu1  ;;  %2017 = vmatpush3.bf16.msra.mxu1 %v2016_v63  ;;  %p2094_p13 = pneg %p2093_p12 }
 0x318   : > { %1160 = vst.msk [vmem:[%s2861_s26 + $0xb0] sm:$0xff] %vm3178_vm7, %v1089_v8  ;;  %v1192_v60 = vsub.f32 %v1089_v8, %v3179_v57  ;;  %v2018_v2 = vpack.c.bf16 %v1223_v22, %v1222_v6 }
 0x319   : > { %v1225_v35 = vmul.f32 %v1193_v45, %v1193_v45  ;;  %p2101_p3 = pnand %p2100_p2, %p2094_p13 }
 0x31a   : > { %v1224_v47 = vmul.f32 %v1192_v60, %v1192_v60  ;;  %v1936_v50 = vpop.f32.mrb[24].mxu1  ;;  %2019 = vmatprep.subr.bf16.mxu1 %v2018_v2 }
 0x31b   : > { %1163 = vst.msk [vmem:[%s2861_s26 + $0xc8] sm:$0xff] %vm3180_vm13, %v1936_v50  ;;  %v1195_v31 = vsub.f32 %v1936_v50, %v3181_v10  ;;  %v1099_v52 = vpop.f32.mrb[25].mxu1  ;;  %2021 = vmatpush3.bf16.msra.mxu1 %v2020_v43 }
 0x31c   : > { %1162 = vst.msk [vmem:[%s2861_s26 + $0xc0] sm:$0xff] %vm3182_vm8, %v1099_v52  ;;  %v1194_v23 = vsub.f32 %v1099_v52, %v3183_v1  ;;  %v2022_v63 = vpack.c.bf16 %v1225_v35, %v1224_v47 }
 0x31d   : > { %v1227_v26 = vmul.f32 %v1195_v31, %v1195_v31 }
 0x31e   : > { %v1226_v12 = vmul.f32 %v1194_v23, %v1194_v23  ;;  %v1939_v51 = vpop.f32.mrb[26].mxu1  ;;  %2023 = vmatprep.subr.bf16.mxu1 %v2022_v63 }
 0x31f   : > { %1165 = vst.msk [vmem:[%s2861_s26 + $0xd8] sm:$0xff] %vm3184_vm9, %v1939_v51  ;;  %v1197_v25 = vsub.f32 %v1939_v51, %v3185_v40  ;;  %v1109_v14 = vpop.f32.mrb[27].mxu1  ;;  %2025 = vmatpush3.bf16.msra.mxu1 %v2024_v48 }
 0x320   : > { %1164 = vst.msk [vmem:[%s2861_s26 + $0xd0] sm:$0xff] %vm3186_vm2, %v1109_v14  ;;  %v1196_v44 = vsub.f32 %v1109_v14, %v3187_v3  ;;  %v2026_v43 = vpack.c.bf16 %v1227_v26, %v1226_v12 }
 0x321   : > { %v1229_v56 = vmul.f32 %v1197_v25, %v1197_v25 }
 0x322   : > { %v1228_v39 = vmul.f32 %v1196_v44, %v1196_v44  ;;  %v1942_v55 = vpop.f32.mrb[28].mxu1  ;;  %2027 = vmatprep.subr.bf16.mxu1 %v2026_v43 }
 0x323   : > { %1167 = vst.msk [vmem:[%s2861_s26 + $0xe8] sm:$0xff] %vm3188_vm3, %v1942_v55  ;;  %v1199_v58 = vsub.f32 %v1942_v55, %v3189_v16  ;;  %v1119_v15 = vpop.f32.mrb[29].mxu1  ;;  %2029 = vmatpush3.bf16.msra.mxu1 %v2028_v30 }
 0x324   : > { %1166 = vst.msk [vmem:[%s2861_s26 + $0xe0] sm:$0xff] %vm3190_vm10, %v1119_v15  ;;  %v1198_v36 = vsub.f32 %v1119_v15, %v2088_v5  ;;  %v2030_v48 = vpack.c.bf16 %v1229_v56, %v1228_v39 }
 0x325   : > { %v1231_v42 = vmul.f32 %v1199_v58, %v1199_v58 }
 0x326   : > { %v1230_v24 = vmul.f32 %v1198_v36, %v1198_v36  ;;  %v1945_v27 = vpop.f32.mrb[30].mxu1  ;;  %2031 = vmatprep.subr.bf16.mxu1 %v2030_v48 }
 0x327   : > { %1169 = vst.msk [vmem:[%s2861_s26 + $0xf8] sm:$0xff] %vm3191_vm11, %v1945_v27  ;;  %v1201_v18 = vsub.f32 %v1945_v27, %v2089_v34  ;;  %v1129_v59 = vpop.f32.mrb[31].mxu1  ;;  %2033 = vmatpush3.bf16.msra.mxu1 %v2032_v37 }
 0x328   : > { %1168 = vst.msk [vmem:[%s2861_s26 + $0xf0] sm:$0xff] %vm3167_vm0, %v1129_v59  ;;  %v1200_v38 = vsub.f32 %v1129_v59, %v2090_v7  ;;  %v2034_v30 = vpack.c.bf16 %v1231_v42, %v1230_v24 }
 0x329   : > { %v1233_v62 = vmul.f32 %v1201_v18, %v1201_v18 }
 0x32a   : > { %v1232_v61 = vmul.f32 %v1200_v38, %v1200_v38  ;;  %2035 = vmatprep.subr.bf16.mxu1 %v2034_v30 }
 0x32b   : > { %2037 = vmatpush3.bf16.msra.mxu1 %v2036_v53  ;;  %v1778_v0 = vpop.f32.mrb[32].mxu0 }
 0x32c   : > { %v2038_v17 = vpack.c.bf16 %v1233_v62, %v1232_v61  ;;  %v1779_v9 = vpop.f32.mrb[33].mxu0 }
 0x32d   : > { %v1780_v49 = vadd.f32 %v1779_v9, %v1778_v0 }
 0x32e   : > { %2039 = vmatprep.subr.bf16.mxu1 %v2038_v17 }
 0x32f   : > { %2041 = vmatpush3.bf16.msra.mxu1 %v2040_v21  ;;  %1304 = vst [vmem:[%s228_s11] sm:$0x1] %v1780_v49 }
 0x332   : > { %1370 = vmatmul.mubr.f32.vlgmr.msra.gmra.mrb[32].mxu1 %v2187_v28 }
 0x333   : > { %2104 = shalt.err (!%p2101_p3)
}
 0x334   : > { %s2105_s17 = scalar_lea.hbm %s3042_s9, 16  ;;  %s2109_s26 = scalar_lea.hbm %s3115_s4, 32 }
 0x335   : > { %p2106_p4 = scmp.ne.s32.totalorder %s3042_s9, %s2105_s17  ;;  %p2110_p9 = scmp.lt.u32.totalorder %s3042_s9, %s3115_s4 }
 0x336   : > { %p2111_p10 = scmp.lt.u32.totalorder %s2109_s26, %s2105_s17  ;;  %p2113_p12 = scmp.lt.u32.totalorder %s2105_s17, %s3042_s9 }
 0x337   : > { %p2107_p7 = pnand %p2106_p4, %p2259_p5 }
 0x338   : > { %p2112_p11 = por %p2111_p10, %p2110_p9 }
 0x339   : > { %p2108_p8 = pneg %p2107_p7 }
 0x33a   : > { %p2114_p13 = por %p2113_p12, %p2112_p11 }
 0x33c   : > { %p2115_p0 = pnand %p2114_p13, %p2108_p8 }
 0x33e   : > { %2118 = shalt.err (!%p2115_p0)
}
 0x33f   : > { %2042 = dma.vmem_to_hbm [thread:$0]  (%p2259_p5), %s1404_s10, 16, %s3042_s9, %s1383_s12   ;;  %vm1375_vm4 = vcmask 32768  }
 0x340   : > { %s234_s6 = scalar_lea.vmem [#allocation4], %s3033_s7  ;;  %s3068_s16 = scalar_lea.hbm %s3116_s5, %s1661_s8 }
 0x341   : > { %s1416_s13 = sshll.u32 %s234_s6, 4  ;;  %s1387_s17 = scalar_lea.sflag [#allocation5], %s3033_s7  ;;  %s3070_s13 = int_to_ptr.vmem [resolvable:$true] %s1416_s13 }
 0x342   : > { %s2119_s9 = scalar_lea.vmem %s3070_s13, 16  ;;  %s2190_s10 = smov [#allocation4]  }
 0x343   : > { %p2120_p1 = scmp.ne.s32.totalorder %s3070_s13, %s2119_s9  ;;  %s2123_s12 = sshll.u32 %s2190_s10, 4  ;;  %s2124_s12 = int_to_ptr.vmem [resolvable:$false] %s2123_s12 }
 0x344   : > { %s2125_s22 = scalar_lea.vmem %s2124_s12, 32  ;;  %p2126_p4 = scmp.lt.s32.totalorder %s3070_s13, %s2124_s12 }
 0x345   : > { %p2121_p2 = pnand %p2120_p1, %p2259_p5  ;;  %p2127_p7 = scmp.lt.s32.totalorder %s2125_s22, %s2119_s9 }
 0x347   : > { %p2122_p3 = pneg %p2121_p2  ;;  %p2128_p8 = por %p2127_p7, %p2126_p4 }
 0x349   : > { %p2129_p9 = pnand %p2128_p8, %p2122_p3 }
 0x405   : > { %v1813_v28 = vpop.f32.mrb[32].mxu1 }
 0x406   : > { %v1814_v37 = vpop.f32.mrb[33].mxu1 }
 0x407   : > { %v1815_v11 = vadd.f32 %v1814_v37, %v1813_v28 }
 0x409   : > { %1376 = vst.msk [vmem:[%s234_s6] sm:$0x1] %vm1375_vm4, %v1815_v11 }
 0x40a   : > { %2132 = shalt.err (!%p2129_p9)
}
 0x40b   : > { %s2133_s7 = scalar_lea.hbm %s3068_s16, 16  ;;  %s2137_s25 = scalar_lea.hbm %s3116_s5, 32 }
 0x40c   : > { %p2134_p10 = scmp.ne.s32.totalorder %s3068_s16, %s2133_s7  ;;  %p2138_p13 = scmp.lt.u32.totalorder %s3068_s16, %s3116_s5 }
 0x40d   : > { %p2139_p0 = scmp.lt.u32.totalorder %s2137_s25, %s2133_s7  ;;  %p2141_p2 = scmp.lt.u32.totalorder %s2133_s7, %s3068_s16 }
 0x40e   : > { %p2135_p11 = pnand %p2134_p10, %p2259_p5 }
 0x40f   : > { %p2140_p1 = por %p2139_p0, %p2138_p13 }
 0x410   : > { %p2136_p12 = pneg %p2135_p11 }
 0x411   : > { %p2142_p3 = por %p2141_p2, %p2140_p1 }
 0x413   : > { %p2143_p4 = pnand %p2142_p3, %p2136_p12 }
 0x415   : > { %2146 = shalt.err (!%p2143_p4)
}
 0x416   : > { %2043 = dma.vmem_to_hbm [thread:$0]  (%p2259_p5), %s3070_s13, 16, %s3068_s16, %s1387_s17  }
 0x417 PF: > { %p2053_p7 = scmp.ge.s32.totalorder %s2185_s21, 2  ;;  %s1436_s30 = sand.u32 1, %s2173_s18  }
 0x418   : > { %s1437_s6 = scalar_lea.sflag [#allocation3], %s1436_s30 }
 0x419   : > { %p2047_p8 = pnand %p2053_p7, %p2263_p6 }
 0x41b   : > { %2164 = dma.done.wait (!%p2047_p8), %s1437_s6, 16  }
 0x41c   : > { %2166 = vsyncadd (!%p2047_p8), %s1437_s6, 4294967280  ;;  %s1445_s14 = scalar_lea.sflag [#allocation5], %s1436_s30 }
 0x41d   : > { %2168 = dma.done.wait (!%p2047_p8), %s1445_s14, 16  }
 0x41e   : > { %2170 = vsyncadd (!%p2047_p8), %s1445_s14, 4294967280  ;;  %p19_p5 = scmp.ge.s32.totalorder %s2246_s24, 4   ;;  %s3192_s18 = smov %s2177_s19 }
 0x41f   : > { %s3193_s19 = smov %s2181_s20  ;;  %s3194_s20 = smov %s2257_s27 }
 0x420   : > { %s3195_s21 = smov %s2246_s24  ;;  %21 = sbr.rel (!%p19_p5) target bundleno = 5 (0x5), region = 96 }
 0x427   :  { %1449 = vsyncpa [#allocation3], 1 }
 0x428   :  { %1451 = vsyncpa [#allocation3 + $0x1], 1 }
 0x429   :  { %1452 = vsyncpa [#allocation5], 1 }
 0x42a   :  { %1454 = vsyncpa [#allocation5 + $0x1], 1 }

</bundles_post_ra>
